<compile_context>
chip_gen: v7x
topology: tpu7x:2x2x1
jax: 0.10.0
libtpu: 0.0.40
codegen_flags: <defaults>
</compile_context>

<pallas_src>
import functools
import math

import jax
import jax.numpy as jnp
from jax.experimental import pallas as pl
from jax.experimental.pallas import tpu as pltpu


# ----------------------------------------------------------------------------
# Parameter setup (glue): positional-encoding table, same math as __init__.
# ----------------------------------------------------------------------------
def make_pe_table(d_model: int, max_len: int = 5000) -> jnp.ndarray:
    position = jnp.arange(0, max_len, dtype=jnp.float32)[:, None]           # (L, 1)
    div_term = jnp.exp(
        jnp.arange(0, d_model, 2, dtype=jnp.float32) * (-math.log(10000.0) / d_model)
    )                                                                        # (D/2,)
    pe = jnp.zeros((max_len, d_model), dtype=jnp.float32)
    pe = pe.at[:, 0::2].set(jnp.sin(position * div_term))
    pe = pe.at[:, 1::2].set(jnp.cos(position * div_term))
    return pe                                                                # (L, D)


# ----------------------------------------------------------------------------
# Tiling helper: largest divisor of S that (a) keeps a block <= ~2 MiB,
# (b) leaves >= 8 grid steps when S allows it, (c) is a multiple of 8
# (sublane-dense) or falls back to the full axis (always a legal block).
# ----------------------------------------------------------------------------
def _choose_seq_tile(S: int, row_bytes: int, target_block_bytes: int = 2 * 1024 * 1024) -> int:
    cap = max(1, target_block_bytes // max(row_bytes, 1))
    if S // 8 >= 8:                      # enough rows to give the pipeline >= 8 steps
        cap = min(cap, S // 8)
    divs = [d for d in range(1, S + 1) if S % d == 0 and d <= cap]
    mult8 = [d for d in divs if d % 8 == 0]
    if mult8:
        return max(mult8)
    return S                             # full-extent block (small / odd S)


# ----------------------------------------------------------------------------
# Pallas kernel: y = dropout(x + pe[:S])  on a lane-dense (ts, B*D) block.
# ----------------------------------------------------------------------------
def _pe_kernel(*refs, batch: int, training: bool, thresh_i32: int, scale: float):
    if training:
        x_ref, pe_ref, bits_ref, o_ref = refs
    else:
        x_ref, pe_ref, o_ref = refs

    x = x_ref[...].astype(jnp.float32)               # (ts, B*D)
    pe = pe_ref[...].astype(jnp.float32)             # (ts, D)
    # Flattened index b*D + d needs pe[:, d]  ->  replicate pe along lanes.
    y = x + jnp.tile(pe, (1, batch))                 # (ts, B*D)

    if training:
        # bits are uniform int32 (signed view of uniform uint32); integer
        # threshold compare gives P(keep) = 1 - p with no float construction.
        keep = bits_ref[...] >= jnp.int32(thresh_i32)
        y = jnp.where(keep, y * jnp.float32(scale), jnp.float32(0.0))

    o_ref[...] = y.astype(o_ref.dtype)


# ----------------------------------------------------------------------------
# Wrapper
# ----------------------------------------------------------------------------
def positional_encoding_forward(
    x: jnp.ndarray,          # (S, B, D)
    pe_table: jnp.ndarray,   # (max_len, D) float32
    *,
    p: float = 0.1,
    training: bool = False,
    rng_key=None,
) -> jnp.ndarray:
    S, B, D = x.shape
    BD = B * D
    pe_slice = pe_table[:S]                          # (S, D), like pe[:x.size(0)]
    x2 = x.reshape(S, BD)                            # lane-dense 2-D view

    itemsize = jnp.dtype(x.dtype).itemsize
    ts = _choose_seq_tile(S, BD * itemsize)
    grid = (S // ts,)

    apply_dropout = bool(training) and float(p) > 0.0

    inputs = [x2, pe_slice]
    in_specs = [
        pl.BlockSpec((ts, BD), lambda i: (i, 0)),
        pl.BlockSpec((ts, D), lambda i: (i, 0)),
    ]
    bytes_accessed = 2 * S * BD * itemsize + S * D * 4
    flops = S * BD

    thresh_i32 = 0
    scale = 1.0
    if apply_dropout:
        if rng_key is None:
            rng_key = jax.random.PRNGKey(0)
        bits_u32 = jax.random.bits(rng_key, (S, BD), dtype=jnp.uint32)
        bits = jax.lax.bitcast_convert_type(bits_u32, jnp.int32)   # signed view
        inputs.append(bits)
        in_specs.append(pl.BlockSpec((ts, BD), lambda i: (i, 0)))
        # unsigned threshold round(p * 2^32), re-expressed for the signed view
        t_u = min((1 << 32) - 1, int(round(float(p) * float(1 << 32))))
        thresh_i32 = t_u - (1 << 31)
        scale = 1.0 / (1.0 - float(p))
        bytes_accessed += S * BD * 4
        flops += 2 * S * BD

    kernel = functools.partial(
        _pe_kernel, batch=B, training=apply_dropout,
        thresh_i32=thresh_i32, scale=scale)

    out2 = pl.pallas_call(
        kernel,
        out_shape=jax.ShapeDtypeStruct((S, BD), x.dtype),
        grid=grid,
        in_specs=in_specs,
        out_specs=pl.BlockSpec((ts, BD), lambda i: (i, 0)),
        compiler_params=pltpu.CompilerParams(
            dimension_semantics=("parallel",),        # independent tiles (2 TCs on v7x)
            vmem_limit_bytes=32 * 1024 * 1024,        # explicit budget; blocks <= ~2 MiB
        ),
        cost_estimate=pl.CostEstimate(
            flops=flops, transcendentals=0, bytes_accessed=bytes_accessed),
    )(*inputs)

    return out2.reshape(S, B, D)


# ----------------------------------------------------------------------------
# Demo / correctness check
# ----------------------------------------------------------------------------
if __name__ == "__main__":
    S, B, D = 64, 4, 128       # seq, batch, d_model  (B*D = 512 -> lane-dense blocks)
    key = jax.random.PRNGKey(0)
    kx, kd = jax.random.split(key)
    x = jax.random.normal(kx, (S, B, D), dtype=jnp.float32)

    pe_table = make_pe_table(d_model=D, max_len=5000)
    ref = x + pe_table[:S][:, None, :]

    # Eval mode: dropout is identity -> exact match with pure-JAX reference.
    y_eval = jax.block_until_ready(
        positional_encoding_forward(x, pe_table, p=0.1, training=False))
    assert y_eval.shape == (S, B, D)
    assert jnp.allclose(y_eval, ref, atol=1e-6), "eval-mode mismatch"

    # Training mode: inverted dropout (keep prob 1-p, survivors scaled 1/(1-p)).
    p = 0.1
    y_train = jax.block_until_ready(
        positional_encoding_forward(x, pe_table, p=p, training=True, rng_key=kd))
    assert y_train.shape == (S, B, D)
    nz = y_train != 0.0
    assert jnp.allclose(jnp.where(nz, y_train, 0.0),
                        jnp.where(nz, ref / (1.0 - p), 0.0), atol=1e-5)
    keep_frac = float(jnp.mean(nz.astype(jnp.float32)))
    assert 0.75 < keep_frac <= 1.0, f"unexpected keep fraction {keep_frac}"

    print("KERNEL_OK")
</pallas_src>

<mosaic_0001>
module attributes {stable_mosaic.version = 11 : i64} {
  func.func @_pe_kernel(%arg0: i32, %arg1: memref<8x512xf32, #tpu.memory_space<vmem>>, %arg2: memref<8x128xf32, #tpu.memory_space<vmem>>, %arg3: memref<8x512xf32, #tpu.memory_space<vmem>>) attributes {dimension_semantics = [#tpu.dimension_semantics<parallel>], iteration_bounds = array<i64: 8>, scalar_prefetch = 0 : i64, scratch_operands = 0 : i64, tpu.core_type = #tpu.core_type<tc>, window_params = [{transform_indices = @transform_0, window_bounds = array<i64: 8, 512>}, {transform_indices = @transform_1, window_bounds = array<i64: 8, 128>}, {transform_indices = @transform_2, window_bounds = array<i64: 8, 512>}]} {
    %c0 = arith.constant 0 : index
    %c0_0 = arith.constant 0 : index
    %0 = vector.load %arg1[%c0, %c0_0] : memref<8x512xf32, #tpu.memory_space<vmem>>, vector<8x512xf32>
    %c0_1 = arith.constant 0 : index
    %c0_2 = arith.constant 0 : index
    %1 = vector.load %arg2[%c0_1, %c0_2] : memref<8x128xf32, #tpu.memory_space<vmem>>, vector<8x128xf32>
    %2 = tpu.concatenate %1, %1, %1, %1 in 1 : vector<8x128xf32>, vector<8x128xf32>, vector<8x128xf32>, vector<8x128xf32> -> vector<8x512xf32>
    %3 = arith.addf %0, %2 : vector<8x512xf32>
    %c0_3 = arith.constant 0 : index
    %c0_4 = arith.constant 0 : index
    %4 = vector.load %arg3[%c0_3, %c0_4] : memref<8x512xf32, #tpu.memory_space<vmem>>, vector<8x512xf32>
    tpu.vector_store %arg3[%c0_3, %c0_4], %3 {strides = array<i32>} : memref<8x512xf32, #tpu.memory_space<vmem>>, vector<8x512xf32>,
    return
  }
  func.func @transform_0(%arg0: i32) -> (i32, i32) {
    %c0_i32 = arith.constant 0 : i32
    %c0_i32_0 = arith.constant 0 : i32
    return %arg0, %c0_i32 : i32, i32
  }
  func.func @transform_1(%arg0: i32) -> (i32, i32) {
    %c0_i32 = arith.constant 0 : i32
    %c0_i32_0 = arith.constant 0 : i32
    return %arg0, %c0_i32 : i32, i32
  }
  func.func @transform_2(%arg0: i32) -> (i32, i32) {
    %c0_i32 = arith.constant 0 : i32
    %c0_i32_0 = arith.constant 0 : i32
    return %arg0, %c0_i32 : i32, i32
  }
}

</mosaic_0001>

<bundles_post_ra>
// kernel: tpu_custom_call.1
= control target key start
LH: loop header
LB: loop body
LE: loop exit
PB: predicated region body
PF: predicated region fallthrough
CT: control target
= control target key end

     0   :  { %7 = vsyncpa [#allocation3], 0  ;;  %s740_s0 = inlined_call_operand.hbm [shape: f32[64,512], index: 0, kind: input, shape index: {}]   ;;  %s741_s1 = inlined_call_operand.hbm [shape: f32[64,128], index: 1, kind: input, shape index: {}]   ;;  %s742_s2 = inlined_call_operand.hbm [shape: f32[64,512], index: 2, kind: output, shape index: {}]  }
   0x1   :  { %9 = vsyncpa [#allocation3 + $0x1], 0 }
   0x2   :  { %10 = vsyncpa [#allocation6], 0 }
   0x3   :  { %12 = vsyncpa [#allocation6 + $0x1], 0 }
   0x4   :  { %13 = vsyncpa [#allocation4], 0 }
   0x5   :  { %15 = vsyncpa [#allocation4 + $0x1], 0  ;;  %s538_s9 = smov 0   ;;  %s540_s10 = smov 0  }
   0x6   :  { %s542_s11 = smov 0   ;;  %s544_s12 = smov 0  }
   0x7 LB: > { %s559_s13 = sadd.s32 4294967295, %s518_s12   ;;  %s318_s14 = sadd.s32 4294967294, %s518_s12   ;;  %s518_s12 = sphi %s544_s12, %s760_s12   ;;  %s514_s11 = sphi %s542_s11, %s759_s11   ;;  %s510_s10 = sphi %s540_s10, %s758_s10   ;;  %s506_s9 = sphi %s538_s9, %s757_s9  }
   0x8   : > { %s563_s15 = sadd.s32 1, %s518_s12   ;;  %s28_s16 = sadd.s32 1, %s514_s11 }
   0x9   : > { %s25_s17 = ssub.s32 %s518_s12, %s563_s15  ;;  %p35_p0 = scmp.ne.s32.totalorder %s514_s11, %s510_s10 }
   0xa   : > { %p26_p1 = scmp.eq.s32.totalorder %s25_s17, 0  ;;  %p36_p2 = scmp.eq.s32.totalorder %s518_s12, 0 }
   0xb   : > { %p41_p3 = scmp.ne.s32.totalorder %s510_s10, %s506_s9  ;;  %p42_p4 = scmp.eq.s32.totalorder %s559_s13, 0 }
   0xc   : > { %s575_s18 = scalar_select %p26_p1, %s514_s11, %s28_s16  }
   0xd   : > { %p577_p5 = por %p36_p2, %p35_p0  ;;  %p581_p6 = por %p42_p4, %p41_p3 }
   0xe   : > { %p91_p7 = scmp.eq.s32.totalorder %s559_s13, 7  ;;  %p97_p8 = scmp.eq.s32.totalorder %s318_s14, 7 }
   0xf   : > { %s746_s20 = scalar_select %p581_p6, 1, 0 }
  0x10   : > { %p354_p9 = scmp.lt.s32.totalorder %s518_s12, 8  ;;  %p587_p10 = por %p91_p7, %p35_p0 }
  0x11   : > { %p591_p11 = por %p97_p8, %p41_p3  ;;  %s596_s23 = sand.u32 1, %s514_s11  }
  0x12   : > { %s747_s21 = scalar_select %p587_p10, 1, 0 }
  0x13   : > { %s748_s22 = scalar_select %p591_p11, 1, 0 }
  0x14   : > { %s335_s24 = sshll.u32 %s518_s12, 9  ;;  %s321_s25 = sshll.u32 %s596_s23, 5 }
  0x15   : > { %s603_s28 = scalar_lea.hbm %s740_s0, %s335_s24  ;;  %s121_s29 = scalar_lea.vmem [#allocation2], %s321_s25 }
  0x16   : > { %s129_s30 = sshll.u32 %s121_s29, 4  ;;  %p607_p12 = pnand %p354_p9, %p577_p5  ;;  %s611_s30 = int_to_ptr.vmem [resolvable:$true] %s129_s30 }
  0x17   : > { %s118_s4 = scalar_lea.sflag [#allocation3], %s596_s23  ;;  %s388_s5 = scalar_lea.hbm %s603_s28, 512 }
  0x18   : > { %p389_p1 = scmp.ne.s32.totalorder %s603_s28, %s388_s5  ;;  %p390_p2 = pneg %p607_p12 }
  0x19   : > { %s393_s8 = scalar_lea.hbm %s740_s0, 4096  ;;  %p394_p5 = scmp.lt.u32.totalorder %s603_s28, %s740_s0 }
  0x1a   : > { %p391_p3 = pnand %p390_p2, %p389_p1  ;;  %p395_p7 = scmp.lt.u32.totalorder %s393_s8, %s388_s5 }
  0x1b   : > { %p397_p9 = scmp.lt.u32.totalorder %s388_s5, %s603_s28 }
  0x1c   : > { %p392_p4 = pneg %p391_p3  ;;  %p396_p8 = por %p395_p7, %p394_p5 }
  0x1e   : > { %p398_p13 = por %p397_p9, %p396_p8 }
  0x20   : > { %p399_p0 = pnand %p398_p13, %p392_p4 }
  0x22   : > { %402 = shalt.err (!%p399_p0)
}
  0x23   : > { %s403_s17 = scalar_lea.vmem %s611_s30, 512  ;;  %s520_s19 = smov [#allocation2]  }
  0x24   : > { %p404_p1 = scmp.ne.s32.totalorder %s611_s30, %s403_s17  ;;  %s408_s24 = sshll.u32 %s520_s19, 4  ;;  %s409_s24 = int_to_ptr.vmem [resolvable:$false] %s408_s24 }
  0x25   : > { %s410_s25 = scalar_lea.vmem %s409_s24, 1024  ;;  %p411_p10 = scmp.lt.s32.totalorder %s611_s30, %s409_s24 }
  0x26   : > { %p406_p3 = pnand %p404_p1, %p390_p2  ;;  %p412_p5 = scmp.lt.s32.totalorder %s410_s25, %s403_s17 }
  0x28   : > { %p407_p11 = pneg %p406_p3  ;;  %p413_p7 = por %p412_p5, %p411_p10 }
  0x2a   : > { %p414_p8 = pnand %p413_p7, %p407_p11 }
  0x2c   : > { %417 = shalt.err (!%p414_p8)
}
  0x2d   : > { %346 = dma.hbm_to_vmem [thread:$0]  (!%p607_p12), %s603_s28, 512, %s611_s30, %s118_s4  }
  0x2e   : > { %p750_p13 = scmp.lt.s32.totalorder %s518_s12, 9  ;;  %p751_p0 = scmp.ge.s32.totalorder %s518_s12, 1 }
  0x2f   : > { %s324_s27 = sshll.u32 %s596_s23, 3  ;;  %s325_s29 = sshll.u32 %s518_s12, 7 }
  0x30   : > { %p645_p4 = pnand %p751_p0, %p750_p13  ;;  %s654_s7 = scalar_lea.hbm %s741_s1, %s325_s29 }
  0x31   : > { %s140_s8 = scalar_lea.vmem [#allocation5], %s324_s27  ;;  %s137_s28 = scalar_lea.sflag [#allocation6], %s596_s23 }
  0x32   : > { %s752_s26 = scalar_select %p645_p4, 1, 0 }
  0x33   : > { %s147_s14 = sshll.u32 %s140_s8, 4  ;;  %s418_s30 = scalar_lea.hbm %s654_s7, 128  ;;  %s148_s14 = int_to_ptr.vmem [resolvable:$true] %s147_s14 }
  0x34   : > { %p419_p10 = scmp.ne.s32.totalorder %s654_s7, %s418_s30  ;;  %s423_s17 = scalar_lea.hbm %s741_s1, 1024 }
  0x35   : > { %p424_p1 = scmp.lt.u32.totalorder %s654_s7, %s741_s1  ;;  %p425_p3 = scmp.lt.u32.totalorder %s423_s17, %s418_s30 }
  0x36   : > { %p421_p11 = pnand %p419_p10, %p390_p2  ;;  %p427_p7 = scmp.lt.u32.totalorder %s418_s30, %s654_s7 }
  0x37   : > { %p426_p5 = por %p425_p3, %p424_p1 }
  0x38   : > { %p422_p9 = pneg %p421_p11 }
  0x39   : > { %p428_p8 = por %p427_p7, %p426_p5 }
  0x3b   : > { %p429_p13 = pnand %p428_p8, %p422_p9 }
  0x3d   : > { %432 = shalt.err (!%p429_p13)
}
  0x3e   : > { %s433_s23 = scalar_lea.vmem %s148_s14, 128  ;;  %s521_s25 = smov [#allocation5]  }
  0x3f   : > { %p434_p0 = scmp.ne.s32.totalorder %s148_s14, %s433_s23  ;;  %s438_s27 = sshll.u32 %s521_s25, 4  ;;  %s439_s27 = int_to_ptr.vmem [resolvable:$false] %s438_s27 }
  0x40   : > { %s440_s29 = scalar_lea.vmem %s439_s27, 256  ;;  %p441_p6 = scmp.lt.s32.totalorder %s148_s14, %s439_s27 }
  0x41   : > { %p436_p10 = pnand %p434_p0, %p390_p2  ;;  %p442_p4 = scmp.lt.s32.totalorder %s440_s29, %s433_s23 }
  0x43   : > { %p437_p11 = pneg %p436_p10  ;;  %p443_p1 = por %p442_p4, %p441_p6 }
  0x45   : > { %p444_p3 = pnand %p443_p1, %p437_p11 }
  0x47   : > { %447 = shalt.err (!%p444_p3)
}
  0x48   : > { %349 = dma.hbm_to_vmem [thread:$0]  (!%p607_p12), %s654_s7, 128, %s148_s14, %s137_s28  }
  0x49   : > { %p753_p9 = scmp.ne.s32.totalorder %s752_s26, 0 }
  0x4a   : > { %s679_s5 = sand.u32 (!%p753_p9), 1, %s510_s10   ;;  %p754_p2 = scmp.ne.s32.totalorder (!%p753_p9), %s746_s20, 0 }
  0x4b   : > { %156 = sbr.rel (%p753_p9) target bundleno = 112 (0x70), region = 28  ;;  %s327_s6 = sshll.u32 (!%p753_p9), %s679_s5, 5 }
  0x4c   : > { %s159_s8 = scalar_lea.sflag (!%p753_p9), [#allocation3], %s679_s5  ;;  %s162_s30 = scalar_lea.vmem (!%p753_p9), [#allocation2], %s327_s6 }
  0x52   : > { %493 = dma.done.wait (%p754_p2), %s159_s8, 512  }
  0x53   : > { %495 = vsyncadd (%p754_p2), %s159_s8, 4294966784  ;;  %s328_s3 = sshll.u32 %s679_s5, 3  ;;  %s168_s26 = scalar_lea.sflag [#allocation6], %s679_s5 }
  0x54   : > { %s171_s7 = scalar_lea.vmem [#allocation5], %s328_s3 }
  0x55   : > { %497 = dma.done.wait (%p754_p2), %s168_s26, 128  }
  0x56   : > { %499 = vsyncadd (%p754_p2), %s168_s26, 4294967168  ;;  %s196_s14 = scalar_lea.vmem [#allocation7], %s327_s6  ;;  %s336_s4 = sshll.u32 %s559_s13, 9  ;;  %v197_v0 = vld [vmem:[%s162_s30] sm:$0xff]  ;;  %v198_v2 = vld [vmem:[%s162_s30 + $0x8] sm:$0xff] }
  0x57   : > { %s225_s28 = sshll.u32 %s196_s14, 4  ;;  %v201_v1 = vld [vmem:[%s171_s7] sm:$0xff]  ;;  %v199_v5 = vld [vmem:[%s162_s30 + $0x10] sm:$0xff]  ;;  %v200_v6 = vld [vmem:[%s162_s30 + $0x18] sm:$0xff]  ;;  %s699_s13 = scalar_lea.hbm %s742_s2, %s336_s4  ;;  %s694_s28 = int_to_ptr.vmem [resolvable:$true] %s225_s28 }
  0x58   : > { %v202_v3 = vadd.f32 %v201_v1, %v197_v0  ;;  %v203_v4 = vadd.f32 %v201_v1, %v198_v2  ;;  %v204_v7 = vadd.f32 %v201_v1, %v199_v5  ;;  %v205_v8 = vadd.f32 %v201_v1, %v200_v6  ;;  %s211_s17 = scalar_lea.sflag [#allocation4], %s679_s5  ;;  %s448_s19 = scalar_lea.vmem %s694_s28, 512 }
  0x59   : > { %p449_p6 = scmp.ne.s32.totalorder %s694_s28, %s448_s19  ;;  %p755_p12 = scmp.ne.s32.totalorder %s747_s21, 0 }
  0x5a   : > { %206 = vst [vmem:[%s196_s14] sm:$0xff] %v202_v3  ;;  %207 = vst [vmem:[%s196_s14 + $0x8] sm:$0xff] %v203_v4  ;;  %s522_s24 = smov [#allocation7]  }
  0x5b   : > { %208 = vst [vmem:[%s196_s14 + $0x10] sm:$0xff] %v204_v7  ;;  %209 = vst [vmem:[%s196_s14 + $0x18] sm:$0xff] %v205_v8  ;;  %p450_p4 = pnand %p449_p6, %p755_p12  ;;  %s452_s23 = sshll.u32 %s522_s24, 4  ;;  %s453_s23 = int_to_ptr.vmem [resolvable:$false] %s452_s23 }
  0x5c   : > { %s454_s25 = scalar_lea.vmem %s453_s23, 1024  ;;  %p455_p7 = scmp.lt.s32.totalorder %s694_s28, %s453_s23 }
  0x5d   : > { %p451_p5 = pneg %p450_p4  ;;  %p456_p8 = scmp.lt.s32.totalorder %s454_s25, %s448_s19 }
  0x5f   : > { %p457_p13 = por %p456_p8, %p455_p7 }
  0x61   : > { %p458_p0 = pnand %p457_p13, %p451_p5 }
  0x63   : > { %461 = shalt.err (!%p458_p0)
}
  0x64   : > { %s462_s27 = scalar_lea.hbm %s699_s13, 512  ;;  %s466_s6 = scalar_lea.hbm %s742_s2, 4096 }
  0x65   : > { %p463_p10 = scmp.ne.s32.totalorder %s699_s13, %s462_s27  ;;  %p467_p3 = scmp.lt.u32.totalorder %s699_s13, %s742_s2 }
  0x66   : > { %p468_p9 = scmp.lt.u32.totalorder %s466_s6, %s462_s27  ;;  %p470_p6 = scmp.lt.u32.totalorder %s462_s27, %s699_s13 }
  0x67   : > { %p464_p11 = pnand %p463_p10, %p755_p12 }
  0x68   : > { %p469_p2 = por %p468_p9, %p467_p3 }
  0x69   : > { %p465_p1 = pneg %p464_p11 }
  0x6a   : > { %p471_p4 = por %p470_p6, %p469_p2 }
  0x6c   : > { %p472_p5 = pnand %p471_p4, %p465_p1 }
  0x6e   : > { %475 = shalt.err (!%p472_p5)
}
  0x6f   : > { %341 = dma.vmem_to_hbm [thread:$0]  (%p755_p12), %s694_s28, 512, %s699_s13, %s211_s17  }
  0x70 PF: > { %p355_p7 = scmp.ge.s32.totalorder %s518_s12, 2  ;;  %s237_s3 = sand.u32 1, %s506_s9  }
  0x71   : > { %p756_p8 = scmp.ne.s32.totalorder %s748_s22, 0  ;;  %s238_s26 = scalar_lea.sflag [#allocation4], %s237_s3 }
  0x73   : > { %p351_p13 = pnand %p355_p7, %p756_p8 }
  0x75   : > { %501 = dma.done.wait (!%p351_p13), %s238_s26, 512  }
  0x76   : > { %503 = vsyncadd (!%p351_p13), %s238_s26, 4294966784  ;;  %p18_p0 = scmp.ge.s32.totalorder %s563_s15, 10   ;;  %s757_s9 = smov %s510_s10 }
  0x77   : > { %s758_s10 = smov %s514_s11  ;;  %s759_s11 = smov %s575_s18 }
  0x78   : > { %s760_s12 = smov %s563_s15  ;;  %20 = sbr.rel (!%p18_p0) target bundleno = 7 (0x7), region = 86 }
  0x7f   :  { %243 = vsyncpa [#allocation3], 1 }
  0x80   :  { %245 = vsyncpa [#allocation3 + $0x1], 1 }
  0x81   :  { %246 = vsyncpa [#allocation6], 1 }
  0x82   :  { %248 = vsyncpa [#allocation6 + $0x1], 1 }
  0x83   :  { %249 = vsyncpa [#allocation4], 1 }
  0x84   :  { %251 = vsyncpa [#allocation4 + $0x1], 1 }

</bundles_post_ra>
